<compile_context>
chip_gen: v7x
topology: tpu7x:2x2x1
jax: 0.10.0
libtpu: 0.0.40
codegen_flags: <defaults>
</compile_context>

<pallas_src>
import numpy as np
import jax
import jax.numpy as jnp
from jax import lax
from jax.experimental import pallas as pl
from jax.experimental.pallas import tpu as pltpu


# ----------------------------------------------------------------------------
# Fused single-kernel forward
# ----------------------------------------------------------------------------
def _build_fused_kernel(block_plan, H, W, M):
    """Builds the fused kernel for a static block plan.

    Ref order: p0, w0, b0, masks, then per block:
        w1_taps, b1, w2_taps, b2, [wd, bd]   (wd/bd only if the block has a
                                              1x1 downsample skip)
    followed by the single (C_final, M) output ref.

    All activations are kept in VMEM as (C, M) f32 with M = N*H*W lane-dense
    (lane layout m = n*H*W + h*W + w).
    """

    def kernel(*refs):
        out_ref = refs[-1]
        it = iter(refs[:-1])
        p0_ref = next(it)       # (K0, M)   im2col^T of the raw input
        w0_ref = next(it)       # (C0, K0)  conv_in weight, BN-scale folded
        b0_ref = next(it)       # (C0, 1)   folded conv-bias + BN shift
        masks_ref = next(it)    # (9, 1, M) 0/1 boundary masks for 3x3 taps

        def conv3x3(x, w_taps_ref, bias, relu):
            # x: (Cin, M); w_taps_ref: (9, Cout, Cin); bias: (Cout, 1)
            cout = w_taps_ref.shape[1]
            acc = jnp.zeros((cout, M), jnp.float32)
            for t in range(9):
                di, dj = t // 3 - 1, t % 3 - 1
                if di == 0 and dj == 0:
                    xs = x
                else:
                    # shifted[m] = x[m + di*W + dj]  (then zero out-of-image)
                    shift = (-(di * W + dj)) % M
                    xs = pltpu.roll(x, shift, axis=1) * masks_ref[t]
                acc = acc + jnp.dot(w_taps_ref[t], xs,
                                    preferred_element_type=jnp.float32)
            y = acc + bias
            return jnp.maximum(y, 0.0) if relu else y

        # conv_in (+ folded BN) + ReLU: plain lane-dense GEMM on the patches.
        x = jnp.dot(w0_ref[...], p0_ref[...], preferred_element_type=jnp.float32)
        x = jnp.maximum(x + b0_ref[...], 0.0)

        # ResBlock(s): out = ReLU(BN(conv2(ReLU(BN(conv1(x)))))) + skip(x)
        for has_down in block_plan:
            w1_ref, b1 = next(it), next(it)[...]
            w2_ref, b2 = next(it), next(it)[...]
            if has_down:
                wd, bd = next(it)[...], next(it)[...]
                sc = jnp.dot(wd, x, preferred_element_type=jnp.float32) + bd
            else:
                sc = x
            h = conv3x3(x, w1_ref, b1, relu=True)
            x = conv3x3(h, w2_ref, b2, relu=True) + sc

        out_ref[...] = x.astype(out_ref.dtype)

    return kernel


def _tap_masks(n, H, W):
    """(9, 1, M) 0/1 masks: masks[t, 0, m] = 1 iff source pixel (h+di, w+dj)
    lies inside the image, for lane layout m = n*H*W + h*W + w and tap
    t = (di+1)*3 + (dj+1).  Precomputed host-side (pure geometry)."""
    M = n * H * W
    lane = np.arange(M)
    h = (lane // W) % H
    w = lane % W
    masks = np.zeros((9, 1, M), np.float32)
    for t in range(9):
        di, dj = t // 3 - 1, t % 3 - 1
        ok = (h + di >= 0) & (h + di < H) & (w + dj >= 0) & (w + dj < W)
        masks[t, 0] = ok.astype(np.float32)
    return jnp.asarray(masks)


# ----------------------------------------------------------------------------
# Wrapper-side layout prep (raw input only) + BN folding (parameter transform)
# ----------------------------------------------------------------------------
def _im2col_T(x, kh, kw, stride, padding):
    """NCHW input -> (C*kh*kw, N*Ho*Wo) patches^T with rows ordered (ci, i, j)
    (matching OIHW weight flattening) and columns ordered (n, ho, wo)."""
    N, C, H, W = x.shape
    if padding:
        x = jnp.pad(x, ((0, 0), (0, 0), (padding, padding), (padding, padding)))
    Ho = (H + 2 * padding - kh) // stride + 1
    Wo = (W + 2 * padding - kw) // stride + 1
    taps = []
    for i in range(kh):
        for j in range(kw):
            taps.append(x[:, :, i:i + stride * Ho:stride, j:j + stride * Wo:stride])
    p = jnp.stack(taps, axis=2)            # (N, C, kh*kw, Ho, Wo)
    p = p.transpose(1, 2, 0, 3, 4)         # (C, kh*kw, N, Ho, Wo)
    return p.reshape(C * kh * kw, N * Ho * Wo), Ho, Wo


def _fold_bn(params, eps=1e-5):
    """Fold BN (inference mode) into conv weight/bias."""
    w, b, gamma, beta, mean, var = params
    scale = gamma / jnp.sqrt(var + eps)
    w_s = w * scale[:, None, None, None]
    bias = (b - mean) * scale + beta
    return w_s, bias


def _conv_params(key, cin, cout, kh, kw):
    k1, k2, k3, k4, k5, k6 = jax.random.split(key, 6)
    fan_in = cin * kh * kw
    w = jax.random.normal(k1, (cout, cin, kh, kw), jnp.float32) / jnp.sqrt(fan_in)
    b = 0.1 * jax.random.normal(k2, (cout,), jnp.float32)
    gamma = 1.0 + 0.1 * jax.random.normal(k3, (cout,), jnp.float32)
    beta = 0.1 * jax.random.normal(k4, (cout,), jnp.float32)
    mean = 0.1 * jax.random.normal(k5, (cout,), jnp.float32)
    var = 1.0 + 0.1 * jax.random.uniform(k6, (cout,), jnp.float32)
    return (w, b, gamma, beta, mean, var)


class ResNetDownPallas:
    """Mirrors ResNetDown(down_conv_nn, kernel_size=2, stride=2, N=1, padding=0)
    with the whole forward fused into one Pallas TPU kernel."""

    def __init__(self, key, down_conv_nn, kernel_size=2, stride=2, N=1, padding=0):
        nc_in, nc_out = down_conv_nn
        nc_stride_out = nc_in if (stride > 1 and N > 0) else nc_out
        nc_block_in = nc_stride_out
        self.kernel_size = kernel_size
        self.stride = stride
        self.padding = padding

        keys = jax.random.split(key, 1 + 3 * max(N, 1))
        self.conv_in = _conv_params(keys[0], nc_in, nc_stride_out,
                                    kernel_size, kernel_size)
        self.blocks = []
        ki = 1
        cin = nc_block_in
        for _ in range(N):
            conv1 = _conv_params(keys[ki], cin, nc_out, 3, 3); ki += 1
            conv2 = _conv_params(keys[ki], nc_out, nc_out, 3, 3); ki += 1
            down = _conv_params(keys[ki], cin, nc_out, 1, 1) if cin != nc_out else None
            ki += 1
            self.blocks.append((conv1, conv2, down))
            cin = nc_out
        self.nc_final = cin

    def __call__(self, x):
        Nb = x.shape[0]

        # Input-side layout prep only: im2col^T of the raw input for the
        # strided conv_in.  Everything downstream stays VMEM-resident.
        p0, Ho, Wo = _im2col_T(x, self.kernel_size, self.kernel_size,
                               self.stride, self.padding)
        M = Nb * Ho * Wo

        # Fold BN into conv weights/bias (constant parameter transform).
        w0s, b0f = _fold_bn(self.conv_in)
        c0 = w0s.shape[0]
        args = [p0, w0s.reshape(c0, -1), b0f.reshape(c0, 1),
                _tap_masks(Nb, Ho, Wo)]

        block_plan = []
        for conv1, conv2, down in self.blocks:
            w1s, b1f = _fold_bn(conv1)
            cout, cin = w1s.shape[0], w1s.shape[1]
            # (Cout, Cin, 3, 3) -> (9, Cout, Cin), tap t = i*3 + j
            args += [w1s.transpose(2, 3, 0, 1).reshape(9, cout, cin),
                     b1f.reshape(cout, 1)]
            w2s, b2f = _fold_bn(conv2)
            args += [w2s.transpose(2, 3, 0, 1).reshape(9, cout, cout),
                     b2f.reshape(cout, 1)]
            if down is not None:
                wds, bdf = _fold_bn(down)
                args += [wds.reshape(cout, cin), bdf.reshape(cout, 1)]
            block_plan.append(down is not None)

        kernel = _build_fused_kernel(block_plan, Ho, Wo, M)

        # Whole problem (weights + masks + all activations < 0.3 MiB) fits in
        # VMEM on v5e / v6e / v7x; single invocation, no grid.
        # TODO(synk): for larger inputs, tile M across a ("parallel",) grid so
        # v7x's two TensorCores both get work; not needed at M = 128.
        out = pl.pallas_call(
            kernel,
            out_shape=jax.ShapeDtypeStruct((self.nc_final, M), jnp.float32),
            in_specs=[pl.BlockSpec(memory_space=pltpu.MemorySpace.VMEM)
                      for _ in args],
            out_specs=pl.BlockSpec(memory_space=pltpu.MemorySpace.VMEM),
        )(*args)

        # Single output layout transform back to NCHW.
        return out.reshape(self.nc_final, Nb, Ho, Wo).transpose(1, 0, 2, 3)


# ----------------------------------------------------------------------------
# Pure-JAX reference (lax.conv, f32-precision) for correctness checking
# ----------------------------------------------------------------------------
def _ref_conv_bn(x, params, stride, padding, relu):
    w, b, gamma, beta, mean, var = params
    y = lax.conv_general_dilated(
        x, w, (stride, stride), [(padding, padding), (padding, padding)],
        dimension_numbers=('NCHW', 'OIHW', 'NCHW'),
        precision=lax.Precision.HIGHEST)
    y = y + b[None, :, None, None]
    scale = (gamma / jnp.sqrt(var + 1e-5))[None, :, None, None]
    y = (y - mean[None, :, None, None]) * scale + beta[None, :, None, None]
    if relu:
        y = jnp.maximum(y, 0.0)
    return y


def _ref_forward(x, model):
    x = _ref_conv_bn(x, model.conv_in, model.stride, model.padding, True)
    for conv1, conv2, down in model.blocks:
        sc = _ref_conv_bn(x, down, 1, 0, False) if down is not None else x
        h = _ref_conv_bn(x, conv1, 1, 1, True)
        x = _ref_conv_bn(h, conv2, 1, 1, True) + sc
    return x


if __name__ == "__main__":
    key = jax.random.PRNGKey(0)
    kx, kp = jax.random.split(key)

    # x: (N=2, C_in=4, H=16, W=16)  -> output (2, 8, 8, 8)
    x = jax.random.normal(kx, (2, 4, 16, 16), jnp.float32)
    model = ResNetDownPallas(kp, down_conv_nn=[4, 8],
                             kernel_size=2, stride=2, N=1, padding=0)

    out = jax.block_until_ready(model(x))
    assert out.shape == (2, 8, 8, 8), out.shape

    ref = jax.block_until_ready(_ref_forward(x, model))
    max_err = float(jnp.max(jnp.abs(out - ref)))
    assert max_err < 1e-4, f"mismatch vs reference: {max_err}"

    print("KERNEL_OK")
</pallas_src>

<mosaic_0001>
module attributes {stable_mosaic.version = 11 : i64} {
  func.func @kernel(%arg0: memref<16x128xf32, #tpu.memory_space<vmem>>, %arg1: memref<4x16xf32, #tpu.memory_space<vmem>>, %arg2: memref<4x1xf32, #tpu.memory_space<vmem>>, %arg3: memref<9x1x128xf32, #tpu.memory_space<vmem>>, %arg4: memref<9x8x4xf32, #tpu.memory_space<vmem>>, %arg5: memref<8x1xf32, #tpu.memory_space<vmem>>, %arg6: memref<9x8x8xf32, #tpu.memory_space<vmem>>, %arg7: memref<8x1xf32, #tpu.memory_space<vmem>>, %arg8: memref<8x4xf32, #tpu.memory_space<vmem>>, %arg9: memref<8x1xf32, #tpu.memory_space<vmem>>, %arg10: memref<8x128xf32, #tpu.memory_space<vmem>>) attributes {dimension_semantics = [], scalar_prefetch = 0 : i64, scratch_operands = 0 : i64, tpu.core_type = #tpu.core_type<tc>} {
    %c0 = arith.constant 0 : index
    %c0_0 = arith.constant 0 : index
    %0 = vector.load %arg1[%c0, %c0_0] : memref<4x16xf32, #tpu.memory_space<vmem>>, vector<4x16xf32>
    %c0_1 = arith.constant 0 : index
    %c0_2 = arith.constant 0 : index
    %1 = vector.load %arg0[%c0_1, %c0_2] : memref<16x128xf32, #tpu.memory_space<vmem>>, vector<16x128xf32>
    %cst = arith.constant dense<0.000000e+00> : vector<4x128xf32>
    %2 = tpu.matmul %0, %1, %cst {dimension_numbers = #tpu.dot_dimension_numbers<[1], [0], [0], [1], [0, 0, 1, 1], [], []>} : vector<4x16xf32>, vector<16x128xf32>, vector<4x128xf32> -> vector<4x128xf32>
    %c0_3 = arith.constant 0 : index
    %c0_4 = arith.constant 0 : index
    %3 = vector.load %arg2[%c0_3, %c0_4] : memref<4x1xf32, #tpu.memory_space<vmem>>, vector<4x1xf32>
    %4 = vector.broadcast %3 : vector<4x1xf32> to vector<4x128xf32>
    %5 = arith.addf %2, %4 : vector<4x128xf32>
    %cst_5 = arith.constant 0.000000e+00 : f32
    %6 = vector.broadcast %cst_5 : f32 to vector<4x128xf32>
    %7 = arith.maximumf %5, %6 : vector<4x128xf32>
    %c0_6 = arith.constant 0 : index
    %c0_7 = arith.constant 0 : index
    %8 = vector.load %arg5[%c0_6, %c0_7] : memref<8x1xf32, #tpu.memory_space<vmem>>, vector<8x1xf32>
    %c0_8 = arith.constant 0 : index
    %c0_9 = arith.constant 0 : index
    %9 = vector.load %arg7[%c0_8, %c0_9] : memref<8x1xf32, #tpu.memory_space<vmem>>, vector<8x1xf32>
    %c0_10 = arith.constant 0 : index
    %c0_11 = arith.constant 0 : index
    %10 = vector.load %arg8[%c0_10, %c0_11] : memref<8x4xf32, #tpu.memory_space<vmem>>, vector<8x4xf32>
    %c0_12 = arith.constant 0 : index
    %c0_13 = arith.constant 0 : index
    %11 = vector.load %arg9[%c0_12, %c0_13] : memref<8x1xf32, #tpu.memory_space<vmem>>, vector<8x1xf32>
    %cst_14 = arith.constant dense<0.000000e+00> : vector<8x128xf32>
    %12 = tpu.matmul %10, %7, %cst_14 {dimension_numbers = #tpu.dot_dimension_numbers<[1], [0], [0], [1], [0, 0, 1, 1], [], []>} : vector<8x4xf32>, vector<4x128xf32>, vector<8x128xf32> -> vector<8x128xf32>
    %13 = vector.broadcast %11 : vector<8x1xf32> to vector<8x128xf32>
    %14 = arith.addf %12, %13 : vector<8x128xf32>
    %cst_15 = arith.constant 0.000000e+00 : f32
    %15 = vector.broadcast %cst_15 : f32 to vector<8x128xf32>
    %c9_i32 = arith.constant 9 : i32
    %16 = tpu.dynamic_rotate %7 by %c9_i32 dim 1 : vector<4x128xf32>, i32 -> vector<4x128xf32>
    %c0_16 = arith.constant 0 : index
    %c0_17 = arith.constant 0 : index
    %c0_18 = arith.constant 0 : index
    %17 = vector.load %arg3[%c0_16, %c0_17, %c0_18] : memref<9x1x128xf32, #tpu.memory_space<vmem>>, vector<1x1x128xf32>
    %18 = vector.shape_cast %17 : vector<1x1x128xf32> to vector<1x128xf32>
    %19 = vector.broadcast %18 : vector<1x128xf32> to vector<4x128xf32>
    %20 = arith.mulf %16, %19 : vector<4x128xf32>
    %c0_19 = arith.constant 0 : index
    %c0_20 = arith.constant 0 : index
    %c0_21 = arith.constant 0 : index
    %21 = vector.load %arg4[%c0_19, %c0_20, %c0_21] : memref<9x8x4xf32, #tpu.memory_space<vmem>>, vector<1x8x4xf32>
    %22 = vector.shape_cast %21 : vector<1x8x4xf32> to vector<8x4xf32>
    %cst_22 = arith.constant dense<0.000000e+00> : vector<8x128xf32>
    %23 = tpu.matmul %22, %20, %cst_22 {dimension_numbers = #tpu.dot_dimension_numbers<[1], [0], [0], [1], [0, 0, 1, 1], [], []>} : vector<8x4xf32>, vector<4x128xf32>, vector<8x128xf32> -> vector<8x128xf32>
    %24 = arith.addf %15, %23 : vector<8x128xf32>
    %c8_i32 = arith.constant 8 : i32
    %25 = tpu.dynamic_rotate %7 by %c8_i32 dim 1 : vector<4x128xf32>, i32 -> vector<4x128xf32>
    %c1 = arith.constant 1 : index
    %c0_23 = arith.constant 0 : index
    %c0_24 = arith.constant 0 : index
    %26 = vector.load %arg3[%c1, %c0_23, %c0_24] : memref<9x1x128xf32, #tpu.memory_space<vmem>>, vector<1x1x128xf32>
    %27 = vector.shape_cast %26 : vector<1x1x128xf32> to vector<1x128xf32>
    %28 = vector.broadcast %27 : vector<1x128xf32> to vector<4x128xf32>
    %29 = arith.mulf %25, %28 : vector<4x128xf32>
    %c1_25 = arith.constant 1 : index
    %c0_26 = arith.constant 0 : index
    %c0_27 = arith.constant 0 : index
    %30 = vector.load %arg4[%c1_25, %c0_26, %c0_27] : memref<9x8x4xf32, #tpu.memory_space<vmem>>, vector<1x8x4xf32>
    %31 = vector.shape_cast %30 : vector<1x8x4xf32> to vector<8x4xf32>
    %cst_28 = arith.constant dense<0.000000e+00> : vector<8x128xf32>
    %32 = tpu.matmul %31, %29, %cst_28 {dimension_numbers = #tpu.dot_dimension_numbers<[1], [0], [0], [1], [0, 0, 1, 1], [], []>} : vector<8x4xf32>, vector<4x128xf32>, vector<8x128xf32> -> vector<8x128xf32>
    %33 = arith.addf %24, %32 : vector<8x128xf32>
    %c7_i32 = arith.constant 7 : i32
    %34 = tpu.dynamic_rotate %7 by %c7_i32 dim 1 : vector<4x128xf32>, i32 -> vector<4x128xf32>
    %c2 = arith.constant 2 : index
    %c0_29 = arith.constant 0 : index
    %c0_30 = arith.constant 0 : index
    %35 = vector.load %arg3[%c2, %c0_29, %c0_30] : memref<9x1x128xf32, #tpu.memory_space<vmem>>, vector<1x1x128xf32>
    %36 = vector.shape_cast %35 : vector<1x1x128xf32> to vector<1x128xf32>
    %37 = vector.broadcast %36 : vector<1x128xf32> to vector<4x128xf32>
    %38 = arith.mulf %34, %37 : vector<4x128xf32>
    %c2_31 = arith.constant 2 : index
    %c0_32 = arith.constant 0 : index
    %c0_33 = arith.constant 0 : index
    %39 = vector.load %arg4[%c2_31, %c0_32, %c0_33] : memref<9x8x4xf32, #tpu.memory_space<vmem>>, vector<1x8x4xf32>
    %40 = vector.shape_cast %39 : vector<1x8x4xf32> to vector<8x4xf32>
    %cst_34 = arith.constant dense<0.000000e+00> : vector<8x128xf32>
    %41 = tpu.matmul %40, %38, %cst_34 {dimension_numbers = #tpu.dot_dimension_numbers<[1], [0], [0], [1], [0, 0, 1, 1], [], []>} : vector<8x4xf32>, vector<4x128xf32>, vector<8x128xf32> -> vector<8x128xf32>
    %42 = arith.addf %33, %41 : vector<8x128xf32>
    %c1_i32 = arith.constant 1 : i32
    %43 = tpu.dynamic_rotate %7 by %c1_i32 dim 1 : vector<4x128xf32>, i32 -> vector<4x128xf32>
    %c3 = arith.constant 3 : index
    %c0_35 = arith.constant 0 : index
    %c0_36 = arith.constant 0 : index
    %44 = vector.load %arg3[%c3, %c0_35, %c0_36] : memref<9x1x128xf32, #tpu.memory_space<vmem>>, vector<1x1x128xf32>
    %45 = vector.shape_cast %44 : vector<1x1x128xf32> to vector<1x128xf32>
    %46 = vector.broadcast %45 : vector<1x128xf32> to vector<4x128xf32>
    %47 = arith.mulf %43, %46 : vector<4x128xf32>
    %c3_37 = arith.constant 3 : index
    %c0_38 = arith.constant 0 : index
    %c0_39 = arith.constant 0 : index
    %48 = vector.load %arg4[%c3_37, %c0_38, %c0_39] : memref<9x8x4xf32, #tpu.memory_space<vmem>>, vector<1x8x4xf32>
    %49 = vector.shape_cast %48 : vector<1x8x4xf32> to vector<8x4xf32>
    %cst_40 = arith.constant dense<0.000000e+00> : vector<8x128xf32>
    %50 = tpu.matmul %49, %47, %cst_40 {dimension_numbers = #tpu.dot_dimension_numbers<[1], [0], [0], [1], [0, 0, 1, 1], [], []>} : vector<8x4xf32>, vector<4x128xf32>, vector<8x128xf32> -> vector<8x128xf32>
    %51 = arith.addf %42, %50 : vector<8x128xf32>
    %c4 = arith.constant 4 : index
    %c0_41 = arith.constant 0 : index
    %c0_42 = arith.constant 0 : index
    %52 = vector.load %arg4[%c4, %c0_41, %c0_42] : memref<9x8x4xf32, #tpu.memory_space<vmem>>, vector<1x8x4xf32>
    %53 = vector.shape_cast %52 : vector<1x8x4xf32> to vector<8x4xf32>
    %cst_43 = arith.constant dense<0.000000e+00> : vector<8x128xf32>
    %54 = tpu.matmul %53, %7, %cst_43 {dimension_numbers = #tpu.dot_dimension_numbers<[1], [0], [0], [1], [0, 0, 1, 1], [], []>} : vector<8x4xf32>, vector<4x128xf32>, vector<8x128xf32> -> vector<8x128xf32>
    %55 = arith.addf %51, %54 : vector<8x128xf32>
    %c127_i32 = arith.constant 127 : i32
    %56 = tpu.dynamic_rotate %7 by %c127_i32 dim 1 : vector<4x128xf32>, i32 -> vector<4x128xf32>
    %c5 = arith.constant 5 : index
    %c0_44 = arith.constant 0 : index
    %c0_45 = arith.constant 0 : index
    %57 = vector.load %arg3[%c5, %c0_44, %c0_45] : memref<9x1x128xf32, #tpu.memory_space<vmem>>, vector<1x1x128xf32>
    %58 = vector.shape_cast %57 : vector<1x1x128xf32> to vector<1x128xf32>
    %59 = vector.broadcast %58 : vector<1x128xf32> to vector<4x128xf32>
    %60 = arith.mulf %56, %59 : vector<4x128xf32>
    %c5_46 = arith.constant 5 : index
    %c0_47 = arith.constant 0 : index
    %c0_48 = arith.constant 0 : index
    %61 = vector.load %arg4[%c5_46, %c0_47, %c0_48] : memref<9x8x4xf32, #tpu.memory_space<vmem>>, vector<1x8x4xf32>
    %62 = vector.shape_cast %61 : vector<1x8x4xf32> to vector<8x4xf32>
    %cst_49 = arith.constant dense<0.000000e+00> : vector<8x128xf32>
    %63 = tpu.matmul %62, %60, %cst_49 {dimension_numbers = #tpu.dot_dimension_numbers<[1], [0], [0], [1], [0, 0, 1, 1], [], []>} : vector<8x4xf32>, vector<4x128xf32>, vector<8x128xf32> -> vector<8x128xf32>
    %64 = arith.addf %55, %63 : vector<8x128xf32>
    %c121_i32 = arith.constant 121 : i32
    %65 = tpu.dynamic_rotate %7 by %c121_i32 dim 1 : vector<4x128xf32>, i32 -> vector<4x128xf32>
    %c6 = arith.constant 6 : index
    %c0_50 = arith.constant 0 : index
    %c0_51 = arith.constant 0 : index
    %66 = vector.load %arg3[%c6, %c0_50, %c0_51] : memref<9x1x128xf32, #tpu.memory_space<vmem>>, vector<1x1x128xf32>
    %67 = vector.shape_cast %66 : vector<1x1x128xf32> to vector<1x128xf32>
    %68 = vector.broadcast %67 : vector<1x128xf32> to vector<4x128xf32>
    %69 = arith.mulf %65, %68 : vector<4x128xf32>
    %c6_52 = arith.constant 6 : index
    %c0_53 = arith.constant 0 : index
    %c0_54 = arith.constant 0 : index
    %70 = vector.load %arg4[%c6_52, %c0_53, %c0_54] : memref<9x8x4xf32, #tpu.memory_space<vmem>>, vector<1x8x4xf32>
    %71 = vector.shape_cast %70 : vector<1x8x4xf32> to vector<8x4xf32>
    %cst_55 = arith.constant dense<0.000000e+00> : vector<8x128xf32>
    %72 = tpu.matmul %71, %69, %cst_55 {dimension_numbers = #tpu.dot_dimension_numbers<[1], [0], [0], [1], [0, 0, 1, 1], [], []>} : vector<8x4xf32>, vector<4x128xf32>, vector<8x128xf32> -> vector<8x128xf32>
    %73 = arith.addf %64, %72 : vector<8x128xf32>
    %c120_i32 = arith.constant 120 : i32
    %74 = tpu.dynamic_rotate %7 by %c120_i32 dim 1 : vector<4x128xf32>, i32 -> vector<4x128xf32>
    %c7 = arith.constant 7 : index
    %c0_56 = arith.constant 0 : index
    %c0_57 = arith.constant 0 : index
    %75 = vector.load %arg3[%c7, %c0_56, %c0_57] : memref<9x1x128xf32, #tpu.memory_space<vmem>>, vector<1x1x128xf32>
    %76 = vector.shape_cast %75 : vector<1x1x128xf32> to vector<1x128xf32>
    %77 = vector.broadcast %76 : vector<1x128xf32> to vector<4x128xf32>
    %78 = arith.mulf %74, %77 : vector<4x128xf32>
    %c7_58 = arith.constant 7 : index
    %c0_59 = arith.constant 0 : index
    %c0_60 = arith.constant 0 : index
    %79 = vector.load %arg4[%c7_58, %c0_59, %c0_60] : memref<9x8x4xf32, #tpu.memory_space<vmem>>, vector<1x8x4xf32>
    %80 = vector.shape_cast %79 : vector<1x8x4xf32> to vector<8x4xf32>
    %cst_61 = arith.constant dense<0.000000e+00> : vector<8x128xf32>
    %81 = tpu.matmul %80, %78, %cst_61 {dimension_numbers = #tpu.dot_dimension_numbers<[1], [0], [0], [1], [0, 0, 1, 1], [], []>} : vector<8x4xf32>, vector<4x128xf32>, vector<8x128xf32> -> vector<8x128xf32>
    %82 = arith.addf %73, %81 : vector<8x128xf32>
    %c119_i32 = arith.constant 119 : i32
    %83 = tpu.dynamic_rotate %7 by %c119_i32 dim 1 : vector<4x128xf32>, i32 -> vector<4x128xf32>
    %c8 = arith.constant 8 : index
    %c0_62 = arith.constant 0 : index
    %c0_63 = arith.constant 0 : index
    %84 = vector.load %arg3[%c8, %c0_62, %c0_63] : memref<9x1x128xf32, #tpu.memory_space<vmem>>, vector<1x1x128xf32>
    %85 = vector.shape_cast %84 : vector<1x1x128xf32> to vector<1x128xf32>
    %86 = vector.broadcast %85 : vector<1x128xf32> to vector<4x128xf32>
    %87 = arith.mulf %83, %86 : vector<4x128xf32>
    %c8_64 = arith.constant 8 : index
    %c0_65 = arith.constant 0 : index
    %c0_66 = arith.constant 0 : index
    %88 = vector.load %arg4[%c8_64, %c0_65, %c0_66] : memref<9x8x4xf32, #tpu.memory_space<vmem>>, vector<1x8x4xf32>
    %89 = vector.shape_cast %88 : vector<1x8x4xf32> to vector<8x4xf32>
    %cst_67 = arith.constant dense<0.000000e+00> : vector<8x128xf32>
    %90 = tpu.matmul %89, %87, %cst_67 {dimension_numbers = #tpu.dot_dimension_numbers<[1], [0], [0], [1], [0, 0, 1, 1], [], []>} : vector<8x4xf32>, vector<4x128xf32>, vector<8x128xf32> -> vector<8x128xf32>
    %91 = arith.addf %82, %90 : vector<8x128xf32>
    %92 = vector.broadcast %8 : vector<8x1xf32> to vector<8x128xf32>
    %93 = arith.addf %91, %92 : vector<8x128xf32>
    %cst_68 = arith.constant 0.000000e+00 : f32
    %94 = vector.broadcast %cst_68 : f32 to vector<8x128xf32>
    %95 = arith.maximumf %93, %94 : vector<8x128xf32>
    %cst_69 = arith.constant 0.000000e+00 : f32
    %96 = vector.broadcast %cst_69 : f32 to vector<8x128xf32>
    %c9_i32_70 = arith.constant 9 : i32
    %97 = tpu.dynamic_rotate %95 by %c9_i32_70 dim 1 : vector<8x128xf32>, i32 -> vector<8x128xf32>
    %c0_71 = arith.constant 0 : index
    %c0_72 = arith.constant 0 : index
    %c0_73 = arith.constant 0 : index
    %98 = vector.load %arg3[%c0_71, %c0_72, %c0_73] : memref<9x1x128xf32, #tpu.memory_space<vmem>>, vector<1x1x128xf32>
    %99 = vector.shape_cast %98 : vector<1x1x128xf32> to vector<1x128xf32>
    %100 = vector.broadcast %99 : vector<1x128xf32> to vector<8x128xf32>
    %101 = arith.mulf %97, %100 : vector<8x128xf32>
    %c0_74 = arith.constant 0 : index
    %c0_75 = arith.constant 0 : index
    %c0_76 = arith.constant 0 : index
    %102 = vector.load %arg6[%c0_74, %c0_75, %c0_76] : memref<9x8x8xf32, #tpu.memory_space<vmem>>, vector<1x8x8xf32>
    %103 = vector.shape_cast %102 : vector<1x8x8xf32> to vector<8x8xf32>
    %cst_77 = arith.constant dense<0.000000e+00> : vector<8x128xf32>
    %104 = tpu.matmul %103, %101, %cst_77 {dimension_numbers = #tpu.dot_dimension_numbers<[1], [0], [0], [1], [0, 0, 1, 1], [], []>} : vector<8x8xf32>, vector<8x128xf32>, vector<8x128xf32> -> vector<8x128xf32>
    %105 = arith.addf %96, %104 : vector<8x128xf32>
    %c8_i32_78 = arith.constant 8 : i32
    %106 = tpu.dynamic_rotate %95 by %c8_i32_78 dim 1 : vector<8x128xf32>, i32 -> vector<8x128xf32>
    %c1_79 = arith.constant 1 : index
    %c0_80 = arith.constant 0 : index
    %c0_81 = arith.constant 0 : index
    %107 = vector.load %arg3[%c1_79, %c0_80, %c0_81] : memref<9x1x128xf32, #tpu.memory_space<vmem>>, vector<1x1x128xf32>
    %108 = vector.shape_cast %107 : vector<1x1x128xf32> to vector<1x128xf32>
    %109 = vector.broadcast %108 : vector<1x128xf32> to vector<8x128xf32>
    %110 = arith.mulf %106, %109 : vector<8x128xf32>
    %c1_82 = arith.constant 1 : index
    %c0_83 = arith.constant 0 : index
    %c0_84 = arith.constant 0 : index
    %111 = vector.load %arg6[%c1_82, %c0_83, %c0_84] : memref<9x8x8xf32, #tpu.memory_space<vmem>>, vector<1x8x8xf32>
    %112 = vector.shape_cast %111 : vector<1x8x8xf32> to vector<8x8xf32>
    %cst_85 = arith.constant dense<0.000000e+00> : vector<8x128xf32>
    %113 = tpu.matmul %112, %110, %cst_85 {dimension_numbers = #tpu.dot_dimension_numbers<[1], [0], [0], [1], [0, 0, 1, 1], [], []>} : vector<8x8xf32>, vector<8x128xf32>, vector<8x128xf32> -> vector<8x128xf32>
    %114 = arith.addf %105, %113 : vector<8x128xf32>
    %c7_i32_86 = arith.constant 7 : i32
    %115 = tpu.dynamic_rotate %95 by %c7_i32_86 dim 1 : vector<8x128xf32>, i32 -> vector<8x128xf32>
    %c2_87 = arith.constant 2 : index
    %c0_88 = arith.constant 0 : index
    %c0_89 = arith.constant 0 : index
    %116 = vector.load %arg3[%c2_87, %c0_88, %c0_89] : memref<9x1x128xf32, #tpu.memory_space<vmem>>, vector<1x1x128xf32>
    %117 = vector.shape_cast %116 : vector<1x1x128xf32> to vector<1x128xf32>
    %118 = vector.broadcast %117 : vector<1x128xf32> to vector<8x128xf32>
    %119 = arith.mulf %115, %118 : vector<8x128xf32>
    %c2_90 = arith.constant 2 : index
    %c0_91 = arith.constant 0 : index
    %c0_92 = arith.constant 0 : index
    %120 = vector.load %arg6[%c2_90, %c0_91, %c0_92] : memref<9x8x8xf32, #tpu.memory_space<vmem>>, vector<1x8x8xf32>
    %121 = vector.shape_cast %120 : vector<1x8x8xf32> to vector<8x8xf32>
    %cst_93 = arith.constant dense<0.000000e+00> : vector<8x128xf32>
    %122 = tpu.matmul %121, %119, %cst_93 {dimension_numbers = #tpu.dot_dimension_numbers<[1], [0], [0], [1], [0, 0, 1, 1], [], []>} : vector<8x8xf32>, vector<8x128xf32>, vector<8x128xf32> -> vector<8x128xf32>
    %123 = arith.addf %114, %122 : vector<8x128xf32>
    %c1_i32_94 = arith.constant 1 : i32
    %124 = tpu.dynamic_rotate %95 by %c1_i32_94 dim 1 : vector<8x128xf32>, i32 -> vector<8x128xf32>
    %c3_95 = arith.constant 3 : index
    %c0_96 = arith.constant 0 : index
    %c0_97 = arith.constant 0 : index
    %125 = vector.load %arg3[%c3_95, %c0_96, %c0_97] : memref<9x1x128xf32, #tpu.memory_space<vmem>>, vector<1x1x128xf32>
    %126 = vector.shape_cast %125 : vector<1x1x128xf32> to vector<1x128xf32>
    %127 = vector.broadcast %126 : vector<1x128xf32> to vector<8x128xf32>
    %128 = arith.mulf %124, %127 : vector<8x128xf32>
    %c3_98 = arith.constant 3 : index
    %c0_99 = arith.constant 0 : index
    %c0_100 = arith.constant 0 : index
    %129 = vector.load %arg6[%c3_98, %c0_99, %c0_100] : memref<9x8x8xf32, #tpu.memory_space<vmem>>, vector<1x8x8xf32>
    %130 = vector.shape_cast %129 : vector<1x8x8xf32> to vector<8x8xf32>
    %cst_101 = arith.constant dense<0.000000e+00> : vector<8x128xf32>
    %131 = tpu.matmul %130, %128, %cst_101 {dimension_numbers = #tpu.dot_dimension_numbers<[1], [0], [0], [1], [0, 0, 1, 1], [], []>} : vector<8x8xf32>, vector<8x128xf32>, vector<8x128xf32> -> vector<8x128xf32>
    %132 = arith.addf %123, %131 : vector<8x128xf32>
    %c4_102 = arith.constant 4 : index
    %c0_103 = arith.constant 0 : index
    %c0_104 = arith.constant 0 : index
    %133 = vector.load %arg6[%c4_102, %c0_103, %c0_104] : memref<9x8x8xf32, #tpu.memory_space<vmem>>, vector<1x8x8xf32>
    %134 = vector.shape_cast %133 : vector<1x8x8xf32> to vector<8x8xf32>
    %cst_105 = arith.constant dense<0.000000e+00> : vector<8x128xf32>
    %135 = tpu.matmul %134, %95, %cst_105 {dimension_numbers = #tpu.dot_dimension_numbers<[1], [0], [0], [1], [0, 0, 1, 1], [], []>} : vector<8x8xf32>, vector<8x128xf32>, vector<8x128xf32> -> vector<8x128xf32>
    %136 = arith.addf %132, %135 : vector<8x128xf32>
    %c127_i32_106 = arith.constant 127 : i32
    %137 = tpu.dynamic_rotate %95 by %c127_i32_106 dim 1 : vector<8x128xf32>, i32 -> vector<8x128xf32>
    %c5_107 = arith.constant 5 : index
    %c0_108 = arith.constant 0 : index
    %c0_109 = arith.constant 0 : index
    %138 = vector.load %arg3[%c5_107, %c0_108, %c0_109] : memref<9x1x128xf32, #tpu.memory_space<vmem>>, vector<1x1x128xf32>
    %139 = vector.shape_cast %138 : vector<1x1x128xf32> to vector<1x128xf32>
    %140 = vector.broadcast %139 : vector<1x128xf32> to vector<8x128xf32>
    %141 = arith.mulf %137, %140 : vector<8x128xf32>
    %c5_110 = arith.constant 5 : index
    %c0_111 = arith.constant 0 : index
    %c0_112 = arith.constant 0 : index
    %142 = vector.load %arg6[%c5_110, %c0_111, %c0_112] : memref<9x8x8xf32, #tpu.memory_space<vmem>>, vector<1x8x8xf32>
    %143 = vector.shape_cast %142 : vector<1x8x8xf32> to vector<8x8xf32>
    %cst_113 = arith.constant dense<0.000000e+00> : vector<8x128xf32>
    %144 = tpu.matmul %143, %141, %cst_113 {dimension_numbers = #tpu.dot_dimension_numbers<[1], [0], [0], [1], [0, 0, 1, 1], [], []>} : vector<8x8xf32>, vector<8x128xf32>, vector<8x128xf32> -> vector<8x128xf32>
    %145 = arith.addf %136, %144 : vector<8x128xf32>
    %c121_i32_114 = arith.constant 121 : i32
    %146 = tpu.dynamic_rotate %95 by %c121_i32_114 dim 1 : vector<8x128xf32>, i32 -> vector<8x128xf32>
    %c6_115 = arith.constant 6 : index
    %c0_116 = arith.constant 0 : index
    %c0_117 = arith.constant 0 : index
    %147 = vector.load %arg3[%c6_115, %c0_116, %c0_117] : memref<9x1x128xf32, #tpu.memory_space<vmem>>, vector<1x1x128xf32>
    %148 = vector.shape_cast %147 : vector<1x1x128xf32> to vector<1x128xf32>
    %149 = vector.broadcast %148 : vector<1x128xf32> to vector<8x128xf32>
    %150 = arith.mulf %146, %149 : vector<8x128xf32>
    %c6_118 = arith.constant 6 : index
    %c0_119 = arith.constant 0 : index
    %c0_120 = arith.constant 0 : index
    %151 = vector.load %arg6[%c6_118, %c0_119, %c0_120] : memref<9x8x8xf32, #tpu.memory_space<vmem>>, vector<1x8x8xf32>
    %152 = vector.shape_cast %151 : vector<1x8x8xf32> to vector<8x8xf32>
    %cst_121 = arith.constant dense<0.000000e+00> : vector<8x128xf32>
    %153 = tpu.matmul %152, %150, %cst_121 {dimension_numbers = #tpu.dot_dimension_numbers<[1], [0], [0], [1], [0, 0, 1, 1], [], []>} : vector<8x8xf32>, vector<8x128xf32>, vector<8x128xf32> -> vector<8x128xf32>
    %154 = arith.addf %145, %153 : vector<8x128xf32>
    %c120_i32_122 = arith.constant 120 : i32
    %155 = tpu.dynamic_rotate %95 by %c120_i32_122 dim 1 : vector<8x128xf32>, i32 -> vector<8x128xf32>
    %c7_123 = arith.constant 7 : index
    %c0_124 = arith.constant 0 : index
    %c0_125 = arith.constant 0 : index
    %156 = vector.load %arg3[%c7_123, %c0_124, %c0_125] : memref<9x1x128xf32, #tpu.memory_space<vmem>>, vector<1x1x128xf32>
    %157 = vector.shape_cast %156 : vector<1x1x128xf32> to vector<1x128xf32>
    %158 = vector.broadcast %157 : vector<1x128xf32> to vector<8x128xf32>
    %159 = arith.mulf %155, %158 : vector<8x128xf32>
    %c7_126 = arith.constant 7 : index
    %c0_127 = arith.constant 0 : index
    %c0_128 = arith.constant 0 : index
    %160 = vector.load %arg6[%c7_126, %c0_127, %c0_128] : memref<9x8x8xf32, #tpu.memory_space<vmem>>, vector<1x8x8xf32>
    %161 = vector.shape_cast %160 : vector<1x8x8xf32> to vector<8x8xf32>
    %cst_129 = arith.constant dense<0.000000e+00> : vector<8x128xf32>
    %162 = tpu.matmul %161, %159, %cst_129 {dimension_numbers = #tpu.dot_dimension_numbers<[1], [0], [0], [1], [0, 0, 1, 1], [], []>} : vector<8x8xf32>, vector<8x128xf32>, vector<8x128xf32> -> vector<8x128xf32>
    %163 = arith.addf %154, %162 : vector<8x128xf32>
    %c119_i32_130 = arith.constant 119 : i32
    %164 = tpu.dynamic_rotate %95 by %c119_i32_130 dim 1 : vector<8x128xf32>, i32 -> vector<8x128xf32>
    %c8_131 = arith.constant 8 : index
    %c0_132 = arith.constant 0 : index
    %c0_133 = arith.constant 0 : index
    %165 = vector.load %arg3[%c8_131, %c0_132, %c0_133] : memref<9x1x128xf32, #tpu.memory_space<vmem>>, vector<1x1x128xf32>
    %166 = vector.shape_cast %165 : vector<1x1x128xf32> to vector<1x128xf32>
    %167 = vector.broadcast %166 : vector<1x128xf32> to vector<8x128xf32>
    %168 = arith.mulf %164, %167 : vector<8x128xf32>
    %c8_134 = arith.constant 8 : index
    %c0_135 = arith.constant 0 : index
    %c0_136 = arith.constant 0 : index
    %169 = vector.load %arg6[%c8_134, %c0_135, %c0_136] : memref<9x8x8xf32, #tpu.memory_space<vmem>>, vector<1x8x8xf32>
    %170 = vector.shape_cast %169 : vector<1x8x8xf32> to vector<8x8xf32>
    %cst_137 = arith.constant dense<0.000000e+00> : vector<8x128xf32>
    %171 = tpu.matmul %170, %168, %cst_137 {dimension_numbers = #tpu.dot_dimension_numbers<[1], [0], [0], [1], [0, 0, 1, 1], [], []>} : vector<8x8xf32>, vector<8x128xf32>, vector<8x128xf32> -> vector<8x128xf32>
    %172 = arith.addf %163, %171 : vector<8x128xf32>
    %173 = vector.broadcast %9 : vector<8x1xf32> to vector<8x128xf32>
    %174 = arith.addf %172, %173 : vector<8x128xf32>
    %cst_138 = arith.constant 0.000000e+00 : f32
    %175 = vector.broadcast %cst_138 : f32 to vector<8x128xf32>
    %176 = arith.maximumf %174, %175 : vector<8x128xf32>
    %177 = arith.addf %176, %14 : vector<8x128xf32>
    %c0_139 = arith.constant 0 : index
    %c0_140 = arith.constant 0 : index
    %178 = vector.load %arg10[%c0_139, %c0_140] : memref<8x128xf32, #tpu.memory_space<vmem>>, vector<8x128xf32>
    tpu.vector_store %arg10[%c0_139, %c0_140], %177 {strides = array<i32>} : memref<8x128xf32, #tpu.memory_space<vmem>>, vector<8x128xf32>,
    return
  }
}

</mosaic_0001>

<bundles_post_ra>
// kernel: tpu_custom_call.1
= control target key start
LH: loop header
LB: loop body
LE: loop exit
PB: predicated region body
PF: predicated region fallthrough
CT: control target
= control target key end

     0   :  { %v1981_v2 = vmov 0.0|0.0   ;;  %vm1982_vm0 = vmmov 0   ;;  %v1983_v4 = vmov 0.0   ;;  %v1984_v6 = vmov 0   ;;  %s2302_s0 = inlined_call_operand.vmem [shape: f32[16,128], index: 0, kind: input, shape index: {}]   ;;  %s2303_s1 = inlined_call_operand.vmem [shape: f32[4,16], index: 1, kind: input, shape index: {}]   ;;  %s2304_s2 = inlined_call_operand.vmem [shape: f32[4,1], index: 2, kind: input, shape index: {}]   ;;  %s2305_s3 = inlined_call_operand.vmem [shape: f32[9,1,128], index: 3, kind: input, shape index: {}]   ;;  %s2306_s4 = inlined_call_operand.vmem [shape: f32[9,8,4], index: 4, kind: input, shape index: {}]   ;;  %s2307_s5 = inlined_call_operand.vmem [shape: f32[8,1], index: 5, kind: input, shape index: {}]   ;;  %s2308_s6 = inlined_call_operand.vmem [shape: f32[9,8,8], index: 6, kind: input, shape index: {}]   ;;  %s2309_s7 = inlined_call_operand.vmem [shape: f32[8,1], index: 7, kind: input, shape index: {}]   ;;  %s2310_s8 = inlined_call_operand.vmem [shape: f32[8,4], index: 8, kind: input, shape index: {}]   ;;  %s2311_s9 = inlined_call_operand.vmem [shape: f32[8,1], index: 9, kind: input, shape index: {}]   ;;  %s2312_s10 = inlined_call_operand.hbm [shape: f32[8,128], index: 10, kind: output, shape index: {}]  }
   0x1   :  { %v37_v0 = vld [vmem:[%s2302_s0] sm:$0xff]  ;;  %v38_v1 = vld [vmem:[%s2302_s0 + $0x8] sm:$0xff]  ;;  %1939 = vmatprep.subr.bf16.mxu0 %v1981_v2  ;;  %1841 = vmatprep.mubr.msk.f32.mxu0 %vm1982_vm0, %v1983_v4 }
   0x2   :  { %v1940_v3 = vpack.c.bf16 %v38_v1, %v37_v0  ;;  %v39_v5 = vld [vmem:[%s2304_s2] sm:$0xf]  ;;  %1955 = vset.pattern.permute.xlu0 %v1984_v6  ;;  %1844 = vmatprep.subr.mxu1 %v1983_v4 }
   0x3   :  { %15 = vsyncpa [#allocation3], 0  ;;  %v36_v7 = vld [vmem:[%s2303_s1] sm:$0xf]  ;;  %vm45_vm1 = vcmask 130048   ;;  %42 = vperm.xlu0 %1955, %v39_v5   ;;  %1846 = vmatprep.mubr.msk.f32.mxu1 %vm1982_vm0, %v1983_v4  ;;  %vm133_vm2 = vcmask 1043456  }
   0x4   :  { %1941 = vmatpush3.bf16.msra.mxu0 %v1940_v3  ;;  %1956 = vset.pattern.permute.xlu1 %v1984_v6  ;;  %v122_v13 = vld [vmem:[%s2310_s8] sm:$0xff]  ;;  %vm129_vm3 = vcmask 31744   ;;  %s1985_s20 = smov 9   ;;  %s1986_s21 = smov 8   ;;  %v1741_v22 = vld [vmem:[%s2306_s4 + $0x8] sm:$0xff]  ;;  %v1748_v29 = vld [vmem:[%s2306_s4 + $0x10] sm:$0xff] }
   0x5   :  { %1854 = vmatprep.subr.mxu0 %v1983_v4  ;;  %s1987_s22 = smov 7   ;;  %s1988_s8 = smov 1   ;;  %v120_v14 = vld [vmem:[%s2307_s5] sm:$0xff]  ;;  %v1753_v32 = vld [vmem:[%s2306_s4 + $0x18] sm:$0xff]  ;;  %v2166_v39 = vld [vmem:[%s2305_s3 + $0x8] ss:$0 sm:$0xff] }
   0x6   :  { %s1989_s23 = smov 127   ;;  %s1990_s24 = smov 121   ;;  %v2091_v15 = vld [vmem:[%s2305_s3] ss:$0 sm:$0xff]  ;;  %v2096_v16 = vld [vmem:[%s2305_s3 + $0x1] ss:$0 sm:$0xff] }
   0x7   :  { %1842 = vmatmul.mubr.msk.f32.vlgmr.msra.gmra.mrb[0].mxu0 %vm45_vm1, %v36_v7  ;;  %s1991_s25 = smov 120   ;;  %s1992_s26 = smov 119   ;;  %v217_v21 = vld [vmem:[%s2306_s4] sm:$0xff]  ;;  %v1761_v40 = vld [vmem:[%s2306_s4 + $0x28] sm:$0xff]  ;;  %v1766_v45 = vld [vmem:[%s2306_s4 + $0x30] sm:$0xff]  ;;  %vm1015_vm4 = vcmask 64512  }
   0x8   :  { %1856 = vmatprep.mubr.msk.f32.mxu0 %vm1982_vm0, %v1983_v4  ;;  %v2109_v23 = vld [vmem:[%s2305_s3 + $0x2] ss:$0 sm:$0xff]  ;;  %v2114_v24 = vld [vmem:[%s2305_s3 + $0x3] ss:$0 sm:$0xff]  ;;  %v2134_v30 = vld [vmem:[%s2305_s3 + $0x5] ss:$0 sm:$0xff] }
   0x9   :  { %v2139_v31 = vld [vmem:[%s2305_s3 + $0x6] ss:$0 sm:$0xff]  ;;  %v2161_v38 = vld [vmem:[%s2305_s3 + $0x7] ss:$0 sm:$0xff]  ;;  %v1771_v46 = vld [vmem:[%s2306_s4 + $0x38] sm:$0xff] }
   0xa   :  { %v1756_v37 = vld [vmem:[%s2306_s4 + $0x20] sm:$0xff] }
   0xb   :  { %v1776_v47 = vld [vmem:[%s2306_s4 + $0x40] sm:$0xff] }
  0x82   :  { %v43_v8 = vpop.permute.xlu0 %42 }
  0xda   :  { %v115_v9 = vpop.f32.mrb[0].mxu0 }
  0xdb   :  { %v116_v10 = vadd.f32 %v115_v9, %v43_v8  ;;  %v1843_v11 = vpop.f32.mrb[1].mxu0 }
  0xdd   :  { %v119_v12 = vmax.f32 %v116_v10, 0.0 }
  0xdf   :  { %207 = vrot.lane.b32.xlu1 %v119_v12, %s1985_s20  ;;  %218 = vrot.lane.b32.xlu0 %v119_v12, %s1986_s21 }
  0xe0   :  { %1845 = vmatpush3.msk.msra.mxu1 %vm133_vm2, %v119_v12 }
  0xe1   :  { %1847 = vmatmul.mubr.msk.f32.vlgmr.msra.gmra.mrb[0].mxu1 %vm129_vm3, %v122_v13  ;;  %1849 = vmatprep.subr.mxu1 %v1983_v4 }
  0xe2   :  { %1851 = vmatprep.mubr.msk.f32.mxu1 %vm1982_vm0, %v1983_v4 }
  0xe3   :  { %383 = vrot.lane.b32.xlu1 %v119_v12, %s1987_s22  ;;  %473 = vrot.lane.b32.xlu0 %v119_v12, %s1988_s8 }
  0xe7   :  { %639 = vrot.lane.b32.xlu1 %v119_v12, %s1989_s23  ;;  %729 = vrot.lane.b32.xlu0 %v119_v12, %s1990_s24 }
  0xeb   :  { %819 = vrot.lane.b32.xlu1 %v119_v12, %s1991_s25  ;;  %909 = vrot.lane.b32.xlu0 %v119_v12, %s1992_s26 }
  0xef   :  { %1001 = vperm.xlu1 %1956, %v120_v14  }
 0x151   :  { %v208_v17 = vpop.permute.xlu1 %207  ;;  %v219_v18 = vpop.permute.xlu0 %218 }
 0x152   :  { %v216_v19 = vmul.f32 %v2091_v15, %v208_v17  ;;  %v228_v20 = vmul.f32 %v2096_v16, %v219_v18  ;;  %v123_v18 = vld [vmem:[%s2311_s9] sm:$0xff] }
 0x154   :  { %1850 = vmatpush3.msk.msra.mxu1 %vm133_vm2, %v228_v20  ;;  %1855 = vmatpush3.msk.msra.mxu0 %vm133_vm2, %v216_v19  ;;  %v121_v19 = vld [vmem:[%s2309_s7] sm:$0xff] }
 0x155   :  { %1857 = vmatmul.mubr.msk.f32.vlgmr.msra.gmra.mrb[2].mxu0 %vm129_vm3, %v217_v21  ;;  %v384_v25 = vpop.permute.xlu1 %383  ;;  %v474_v26 = vpop.permute.xlu0 %473  ;;  %1852 = vmatmul.mubr.msk.f32.vlgmr.msra.gmra.mrb[2].mxu1 %vm129_vm3, %v1741_v22 }
 0x156   :  { %v393_v27 = vmul.f32 %v2109_v23, %v384_v25  ;;  %v483_v28 = vmul.f32 %v2114_v24, %v474_v26  ;;  %1859 = vmatprep.subr.mxu1 %v1983_v4  ;;  %1864 = vmatprep.subr.mxu0 %v1983_v4  ;;  %v1779_v26 = vld [vmem:[%s2308_s6 + $0x8] sm:$0xff] }
 0x157   :  { %1861 = vmatprep.mubr.msk.f32.mxu1 %vm1982_vm0, %v1983_v4  ;;  %1866 = vmatprep.mubr.msk.f32.mxu0 %vm1982_vm0, %v1983_v4 }
 0x158   :  { %1860 = vmatpush3.msk.msra.mxu1 %vm133_vm2, %v393_v27  ;;  %1865 = vmatpush3.msk.msra.mxu0 %vm133_vm2, %v483_v28  ;;  %v1009_v27 = vld [vmem:[%s2308_s6] sm:$0xff] }
 0x159   :  { %v640_v33 = vpop.permute.xlu1 %639  ;;  %v730_v34 = vpop.permute.xlu0 %729  ;;  %1862 = vmatmul.mubr.msk.f32.vlgmr.msra.gmra.mrb[4].mxu1 %vm129_vm3, %v1748_v29  ;;  %1869 = vmatprep.subr.mxu1 %v1983_v4 }
 0x15a   :  { %v649_v35 = vmul.f32 %v2134_v30, %v640_v33  ;;  %v739_v36 = vmul.f32 %v2139_v31, %v730_v34  ;;  %1867 = vmatmul.mubr.msk.f32.vlgmr.msra.gmra.mrb[4].mxu0 %vm129_vm3, %v1753_v32  ;;  %1870 = vmatpush3.msk.msra.mxu1 %vm133_vm2, %v119_v12  ;;  %v1782_v32 = vld [vmem:[%s2308_s6 + $0x10] sm:$0xff] }
 0x15b   :  { %1874 = vmatprep.subr.mxu0 %v1983_v4  ;;  %1871 = vmatprep.mubr.msk.f32.mxu1 %vm1982_vm0, %v1983_v4 }
 0x15c   :  { %1875 = vmatpush3.msk.msra.mxu0 %vm133_vm2, %v649_v35  ;;  %1879 = vmatprep.subr.mxu1 %v1983_v4 }
 0x15d   :  { %v820_v41 = vpop.permute.xlu1 %819  ;;  %1876 = vmatprep.mubr.msk.f32.mxu0 %vm1982_vm0, %v1983_v4  ;;  %v910_v42 = vpop.permute.xlu0 %909  ;;  %1872 = vmatmul.mubr.msk.f32.vlgmr.msra.gmra.mrb[6].mxu1 %vm129_vm3, %v1756_v37  ;;  %v1788_v37 = vld [vmem:[%s2308_s6 + $0x28] sm:$0xff] }
 0x15e   :  { %v829_v43 = vmul.f32 %v2161_v38, %v820_v41  ;;  %v919_v44 = vmul.f32 %v2166_v39, %v910_v42  ;;  %1880 = vmatpush3.msk.msra.mxu1 %vm133_vm2, %v739_v36  ;;  %1877 = vmatmul.mubr.msk.f32.vlgmr.msra.gmra.mrb[6].mxu0 %vm129_vm3, %v1761_v40  ;;  %v1786_v36 = vld [vmem:[%s2308_s6 + $0x20] sm:$0xff]  ;;  %v1790_v42 = vld [vmem:[%s2308_s6 + $0x30] sm:$0xff] }
 0x15f   :  { %1884 = vmatprep.subr.mxu0 %v1983_v4  ;;  %1881 = vmatprep.mubr.msk.f32.mxu1 %vm1982_vm0, %v1983_v4 }
 0x160   :  { %1885 = vmatpush3.msk.msra.mxu0 %vm133_vm2, %v829_v43  ;;  %1889 = vmatprep.subr.mxu1 %v1983_v4  ;;  %v1792_v43 = vld [vmem:[%s2308_s6 + $0x38] sm:$0xff] }
 0x161   :  { %1882 = vmatmul.mubr.msk.f32.vlgmr.msra.gmra.mrb[8].mxu1 %vm129_vm3, %v1766_v45  ;;  %1886 = vmatprep.mubr.msk.f32.mxu0 %vm1982_vm0, %v1983_v4 }
 0x162   :  { %1890 = vmatpush3.msk.msra.mxu1 %vm133_vm2, %v919_v44  ;;  %1887 = vmatmul.mubr.msk.f32.vlgmr.msra.gmra.mrb[8].mxu0 %vm129_vm3, %v1771_v46 }
 0x163   :  { %1891 = vmatprep.mubr.msk.f32.mxu1 %vm1982_vm0, %v1983_v4  ;;  %1894 = vmatprep.subr.mxu0 %v1983_v4 }
 0x164   :  { %1899 = vmatprep.subr.mxu1 %v1983_v4  ;;  %1896 = vmatprep.mubr.msk.f32.mxu0 %vm1982_vm0, %v1983_v4 }
 0x165   :  { %1892 = vmatmul.mubr.msk.f32.vlgmr.msra.gmra.mrb[10].mxu1 %vm129_vm3, %v1776_v47 }
 0x166   :  { %1901 = vmatprep.mubr.msk.f32.mxu1 %vm1982_vm0, %v1983_v4 }
 0x16e   :  { %v1002_v11 = vpop.permute.xlu1 %1001 }
 0x1b4   :  { %v2208_v48 = vpop.f32.mrb[0].mxu1 }
 0x1b5   :  { %v1848_v49 = vpop.f32.mrb[1].mxu1 }
 0x228   :  { %v303_v50 = vpop.f32.mrb[2].mxu1  ;;  %v379_v51 = vpop.f32.mrb[2].mxu0 }
 0x229   :  { %v380_v52 = vadd.f32 %v379_v51, %v303_v50  ;;  %v1853_v53 = vpop.f32.mrb[3].mxu1  ;;  %v1858_v54 = vpop.f32.mrb[3].mxu0 }
 0x22c   :  { %v468_v55 = vpop.f32.mrb[4].mxu1 }
 0x22d   :  { %v472_v56 = vadd.f32 %v468_v55, %v380_v52  ;;  %v1863_v57 = vpop.f32.mrb[5].mxu1  ;;  %v558_v58 = vpop.f32.mrb[4].mxu0 }
 0x22e   :  { %v1868_v59 = vpop.f32.mrb[5].mxu0 }
 0x22f   :  { %v562_v60 = vadd.f32 %v558_v58, %v472_v56 }
 0x230   :  { %v634_v61 = vpop.f32.mrb[6].mxu1 }
 0x231   :  { %v638_v62 = vadd.f32 %v634_v61, %v562_v60  ;;  %v1873_v63 = vpop.f32.mrb[7].mxu1  ;;  %v724_v0 = vpop.f32.mrb[6].mxu0 }
 0x232   :  { %v1878_v1 = vpop.f32.mrb[7].mxu0 }
 0x233   :  { %v728_v2 = vadd.f32 %v724_v0, %v638_v62 }
 0x234   :  { %v814_v3 = vpop.f32.mrb[8].mxu1 }
 0x235   :  { %v818_v5 = vadd.f32 %v814_v3, %v728_v2  ;;  %v1883_v6 = vpop.f32.mrb[9].mxu1  ;;  %v904_v7 = vpop.f32.mrb[8].mxu0 }
 0x236   :  { %v1888_v8 = vpop.f32.mrb[9].mxu0 }
 0x237   :  { %v908_v9 = vadd.f32 %v904_v7, %v818_v5 }
 0x238   :  { %v994_v10 = vpop.f32.mrb[10].mxu1 }
 0x239   :  { %v998_v12 = vadd.f32 %v994_v10, %v908_v9  ;;  %v1893_v13 = vpop.f32.mrb[11].mxu1 }
 0x23b   :  { %v1004_v14 = vadd.f32 %v1002_v11, %v998_v12 }
 0x23d   :  { %v1005_v17 = vmax.f32 %v1004_v14, 0.0 }
 0x23f   :  { %1006 = vrot.lane.b32.xlu1 %v1005_v17, %s1985_s20  ;;  %1010 = vrot.lane.b32.xlu0 %v1005_v17, %s1986_s21 }
 0x243   :  { %1241 = vrot.lane.b32.xlu1 %v1005_v17, %s1988_s8  ;;  %1162 = vrot.lane.b32.xlu0 %v1005_v17, %s1987_s22 }
 0x247   :  { %1475 = vrot.lane.b32.xlu1 %v1005_v17, %s1990_s24  ;;  %1396 = vrot.lane.b32.xlu0 %v1005_v17, %s1989_s23 }
 0x24b   :  { %1633 = vrot.lane.b32.xlu1 %v1005_v17, %s1992_s26  ;;  %1554 = vrot.lane.b32.xlu0 %v1005_v17, %s1991_s25 }
 0x24f   :  { %126 = vperm.xlu1 %1956, %v123_v18   ;;  %1714 = vperm.xlu0 %1955, %v121_v19  }
 0x2b1   :  { %v1007_v20 = vpop.permute.xlu1 %1006  ;;  %v1011_v21 = vpop.permute.xlu0 %1010 }
 0x2b2   :  { %v1008_v22 = vmul.f32 %v2091_v15, %v1007_v20  ;;  %v1012_v25 = vmul.f32 %v2096_v16, %v1011_v21 }
 0x2b4   :  { %1895 = vmatpush3.msra.mxu0 %v1012_v25  ;;  %1900 = vmatpush3.msra.mxu1 %v1008_v22 }
 0x2b5   :  { %v1242_v28 = vpop.permute.xlu1 %1241  ;;  %1897 = vmatmul.mubr.msk.f32.vlgmr.msra.gmra.mrb[10].mxu0 %vm1015_vm4, %v1779_v26  ;;  %v1163_v29 = vpop.permute.xlu0 %1162  ;;  %1902 = vmatmul.mubr.msk.f32.vlgmr.msra.gmra.mrb[12].mxu1 %vm1015_vm4, %v1009_v27 }
 0x2b6   :  { %v1243_v15 = vmul.f32 %v2114_v24, %v1242_v28  ;;  %v1164_v16 = vmul.f32 %v2109_v23, %v1163_v29  ;;  %1904 = vmatprep.subr.mxu0 %v1983_v4  ;;  %1909 = vmatprep.subr.mxu1 %v1983_v4  ;;  %v1784_v24 = vld [vmem:[%s2308_s6 + $0x18] sm:$0xff] }
 0x2b7   :  { %1906 = vmatprep.mubr.msk.f32.mxu0 %vm1982_vm0, %v1983_v4  ;;  %1911 = vmatprep.mubr.msk.f32.mxu1 %vm1982_vm0, %v1983_v4 }
 0x2b8   :  { %1905 = vmatpush3.msra.mxu0 %v1164_v16  ;;  %1910 = vmatpush3.msra.mxu1 %v1243_v15 }
 0x2b9   :  { %v1476_v23 = vpop.permute.xlu1 %1475  ;;  %1907 = vmatmul.mubr.msk.f32.vlgmr.msra.gmra.mrb[12].mxu0 %vm1015_vm4, %v1782_v32  ;;  %1914 = vmatprep.subr.mxu0 %v1983_v4  ;;  %v1397_v33 = vpop.permute.xlu0 %1396 }
 0x2ba   :  { %v1477_v34 = vmul.f32 %v2139_v31, %v1476_v23  ;;  %v1398_v35 = vmul.f32 %v2134_v30, %v1397_v33  ;;  %1915 = vmatpush3.msra.mxu0 %v1005_v17  ;;  %1912 = vmatmul.mubr.msk.f32.vlgmr.msra.gmra.mrb[14].mxu1 %vm1015_vm4, %v1784_v24 }
 0x2bb   :  { %1919 = vmatprep.subr.mxu1 %v1983_v4  ;;  %1916 = vmatprep.mubr.msk.f32.mxu0 %vm1982_vm0, %v1983_v4 }
 0x2bc   :  { %1920 = vmatpush3.msra.mxu1 %v1398_v35  ;;  %1924 = vmatprep.subr.mxu0 %v1983_v4 }
 0x2bd   :  { %v1634_v30 = vpop.permute.xlu1 %1633  ;;  %1917 = vmatmul.mubr.msk.f32.vlgmr.msra.gmra.mrb[14].mxu0 %vm1015_vm4, %v1786_v36  ;;  %v1555_v31 = vpop.permute.xlu0 %1554  ;;  %1921 = vmatprep.mubr.msk.f32.mxu1 %vm1982_vm0, %v1983_v4 }
 0x2be   :  { %v1635_v40 = vmul.f32 %v2166_v39, %v1634_v30  ;;  %1925 = vmatpush3.msra.mxu0 %v1477_v34  ;;  %v1556_v41 = vmul.f32 %v2161_v38, %v1555_v31  ;;  %1922 = vmatmul.mubr.msk.f32.vlgmr.msra.gmra.mrb[16].mxu1 %vm1015_vm4, %v1788_v37  ;;  %v1794_v38 = vld [vmem:[%s2308_s6 + $0x40] sm:$0xff]  ;;  %s1993_s6 = smov [#allocation2]  }
 0x2bf   :  { %1929 = vmatprep.subr.mxu1 %v1983_v4  ;;  %1926 = vmatprep.mubr.msk.f32.mxu0 %vm1982_vm0, %v1983_v4  ;;  %s1727_s18 = sshll.u32 %s1993_s6, 4  ;;  %s1728_s18 = int_to_ptr.vmem [resolvable:$true] %s1727_s18 }
 0x2c0   :  { %1930 = vmatpush3.msra.mxu1 %v1556_v41  ;;  %1934 = vmatprep.subr.mxu0 %v1983_v4  ;;  %s1957_s3 = scalar_lea.vmem %s1728_s18, 128  ;;  %p1962_p1 = scmp.lt.s32.totalorder %s1728_s18, %s1728_s18 }
 0x2c1   :  { %1927 = vmatmul.mubr.msk.f32.vlgmr.msra.gmra.mrb[16].mxu0 %vm1015_vm4, %v1790_v42  ;;  %1931 = vmatprep.mubr.msk.f32.mxu1 %vm1982_vm0, %v1983_v4  ;;  %p1958_p0 = scmp.ne.s32.totalorder %s1728_s18, %s1957_s3  ;;  %p1963_p2 = scmp.lt.s32.totalorder %s1957_s3, %s1957_s3 }
 0x2c2   :  { %1935 = vmatpush3.msra.mxu0 %v1635_v40  ;;  %1932 = vmatmul.mubr.msk.f32.vlgmr.msra.gmra.mrb[18].mxu1 %vm1015_vm4, %v1792_v43 }
 0x2c3   :  { %1936 = vmatprep.mubr.msk.f32.mxu0 %vm1982_vm0, %v1983_v4  ;;  %p1964_p3 = por %p1963_p2, %p1962_p1 }
 0x2c5   :  { %1937 = vmatmul.mubr.msk.f32.vlgmr.msra.gmra.mrb[18].mxu0 %vm1015_vm4, %v1794_v38  ;;  %p1965_p4 = pnand %p1964_p3, %p1958_p0 }
 0x2ce   :  { %v127_v6 = vpop.permute.xlu1 %126  ;;  %v1715_v7 = vpop.permute.xlu0 %1714 }
 0x2cf   :  { %v204_v9 = vadd.f32 %v2208_v48, %v127_v6 }
 0x388   :  { %v1085_v39 = vpop.f32.mrb[10].mxu0  ;;  %v1158_v44 = vpop.f32.mrb[12].mxu1 }
 0x389   :  { %v1159_v45 = vadd.f32 %v1158_v44, %v1085_v39  ;;  %v1898_v46 = vpop.f32.mrb[11].mxu0  ;;  %v1903_v47 = vpop.f32.mrb[13].mxu1 }
 0x38c   :  { %v1236_v49 = vpop.f32.mrb[12].mxu0 }
 0x38d   :  { %v1240_v50 = vadd.f32 %v1236_v49, %v1159_v45  ;;  %v1315_v51 = vpop.f32.mrb[14].mxu1  ;;  %v1908_v52 = vpop.f32.mrb[13].mxu0 }
 0x38e   :  { %v1913_v53 = vpop.f32.mrb[15].mxu1 }
 0x38f   :  { %v1319_v54 = vadd.f32 %v1315_v51, %v1240_v50 }
 0x390   :  { %v1391_v55 = vpop.f32.mrb[14].mxu0 }
 0x391   :  { %v1395_v56 = vadd.f32 %v1391_v55, %v1319_v54  ;;  %v1470_v57 = vpop.f32.mrb[16].mxu1  ;;  %v1918_v58 = vpop.f32.mrb[15].mxu0 }
 0x392   :  { %v1923_v59 = vpop.f32.mrb[17].mxu1 }
 0x393   :  { %v1474_v60 = vadd.f32 %v1470_v57, %v1395_v56 }
 0x394   :  { %v1549_v4 = vpop.f32.mrb[16].mxu0 }
 0x395   :  { %v1553_v61 = vadd.f32 %v1549_v4, %v1474_v60  ;;  %v1628_v62 = vpop.f32.mrb[18].mxu1  ;;  %v1928_v63 = vpop.f32.mrb[17].mxu0 }
 0x396   :  { %v1933_v0 = vpop.f32.mrb[19].mxu1 }
 0x397   :  { %v1632_v1 = vadd.f32 %v1628_v62, %v1553_v61 }
 0x398   :  { %v1707_v2 = vpop.f32.mrb[18].mxu0 }
 0x399   :  { %v1711_v3 = vadd.f32 %v1707_v2, %v1632_v1  ;;  %v1938_v5 = vpop.f32.mrb[19].mxu0 }
 0x39b   :  { %v1717_v8 = vadd.f32 %v1715_v7, %v1711_v3 }
 0x39d   :  { %v1718_v10 = vmax.f32 %v1717_v8, 0.0 }
 0x39f   :  { %v1719_v11 = vadd.f32 %v1718_v10, %v204_v9 }
 0x3a1   :  { %1720 = vst [vmem:[#allocation2] sm:$0xff] %v1719_v11 }
 0x3a2   :  { %1968 = shalt.err (!%p1965_p4)
}
 0x3a3   :  { %s1969_s2 = scalar_lea.hbm %s2312_s10, 128 }
 0x3a4   :  { %p1970_p5 = scmp.ne.s32.totalorder %s2312_s10, %s1969_s2  ;;  %p1973_p6 = scmp.lt.u32.totalorder %s1969_s2, %s2312_s10 }
 0x3a6   :  { %p1975_p7 = pnand %p1973_p6, %p1970_p5 }
 0x3a8   :  { %1978 = shalt.err (!%p1975_p7)
}
 0x3a9   :  { %1730 = dma.vmem_to_hbm [thread:$0]  %s1728_s18, 128, %s2312_s10, [#allocation3]  }
 0x3aa   :  { %1979 = dma.done.wait [#allocation3], 128  }
 0x3ab   :  { %1980 = vsyncadd [#allocation3], 4294967168 }
 0x3ac   :  { %1734 = vsyncpa [#allocation3], 1 }

</bundles_post_ra>
